<compile_context>
chip_gen: v5e
topology: v5e:2x2
jax: 0.10.0
libtpu: 0.0.40
codegen_flags: <defaults>
</compile_context>

<pallas_src>
import functools

import jax
import jax.numpy as jnp
from jax.experimental import pallas as pl
from jax.experimental.pallas import tpu as pltpu

LANE = 128


def _round_up(x, m):
    return (x + m - 1) // m * m


def _pad_axis(a, axis, multiple):
    pad = _round_up(a.shape[axis], multiple) - a.shape[axis]
    if pad == 0:
        return a
    widths = [(0, 0)] * a.ndim
    widths[axis] = (0, pad)
    return jnp.pad(a, widths)


# --------------------------------------------------------------------------
# One-time hardware / feature queries
# --------------------------------------------------------------------------
@functools.lru_cache(maxsize=None)
def _vmem_capacity_bytes():
    """Physical per-core VMEM; conservative 64 MiB fallback (v7x per-TC)."""
    try:
        cap = getattr(pltpu.get_tpu_info(), "vmem_capacity_bytes", None)
        if cap:
            return int(cap)
    except Exception:  # narrow purpose: info query only
        pass
    return 64 * 1024 * 1024


@functools.lru_cache(maxsize=None)
def _buffered1_supported():
    """Probe once whether pipeline_mode=pl.Buffered(1) is accepted on a
    grid-invariant top-level BlockSpec (used to single-buffer weights)."""
    def probe(x_ref, o_ref):
        o_ref[...] = x_ref[...]

    try:
        x = jnp.zeros((8, LANE), jnp.float32)
        out = pl.pallas_call(
            probe,
            out_shape=jax.ShapeDtypeStruct((16, LANE), jnp.float32),
            grid=(2,),
            in_specs=[pl.BlockSpec((8, LANE), lambda i: (0, 0),
                                   pipeline_mode=pl.Buffered(1))],
            out_specs=pl.BlockSpec((8, LANE), lambda i: (i, 0)),
        )(x)
        jax.block_until_ready(out)
        return True
    except Exception:
        return False


# --------------------------------------------------------------------------
# Kernel
# --------------------------------------------------------------------------
def mlp_kernel(x_ref, w1_ref, b1_ref, w2_ref, b2_ref, w3_ref, b3_ref,
               w4_ref, b4_ref, o_ref):
    """y = (((x@W1+b1)@W2+b2)@W3+b3)@W4+b4 — fp32 accumulation & epilogue."""
    cdt = w1_ref.dtype  # MXU operand dtype (bf16 by default)
    h = jnp.dot(x_ref[...], w1_ref[...],
                preferred_element_type=jnp.float32) + b1_ref[...]
    h = jnp.dot(h.astype(cdt), w2_ref[...],
                preferred_element_type=jnp.float32) + b2_ref[...]
    h = jnp.dot(h.astype(cdt), w3_ref[...],
                preferred_element_type=jnp.float32) + b3_ref[...]
    h = jnp.dot(h.astype(cdt), w4_ref[...],
                preferred_element_type=jnp.float32) + b4_ref[...]
    o_ref[...] = h.astype(o_ref.dtype)


# --------------------------------------------------------------------------
# Parameter preparation (done ONCE, not per forward call)
# --------------------------------------------------------------------------
def prepare_params(params, compute_dtype=jnp.bfloat16):
    """Pad feature dims to multiples of 128 and cast weights to the MXU
    operand dtype (biases stay fp32).  Returns a dict to pass to
    linear_mlp_forward; do this once and reuse across calls."""
    flat = []
    for idx in range(1, 5):
        w = _pad_axis(_pad_axis(params[f"w{idx}"], 0, LANE), 1, LANE)
        b = _pad_axis(params[f"b{idx}"], 1, LANE)
        flat += [w.astype(compute_dtype), b.astype(jnp.float32)]
    return {
        "flat": tuple(flat),
        "d_in": params["w1"].shape[0],
        "d_out": params["w4"].shape[1],
        "compute_dtype": compute_dtype,
    }


# --------------------------------------------------------------------------
# Forward
# --------------------------------------------------------------------------
def linear_mlp_forward(x, prepared, *, tb=256, out_dtype=jnp.float32):
    """Fused forward.  x: (B, D_in) fp32.  prepared: output of prepare_params."""
    flat_params = prepared["flat"]
    d_out = prepared["d_out"]
    compute_dtype = prepared["compute_dtype"]

    ws = flat_params[0::2]
    d_in_p = ws[0].shape[0]
    d_out_p = ws[3].shape[1]

    B, _ = x.shape
    # Pad activation features (exact, zero columns) and batch to a whole tile.
    xp = _pad_axis(x, 1, LANE)
    assert xp.shape[1] == d_in_p, "x feature dim does not match prepared params"
    tb = min(tb, _round_up(B, 8))
    B_pad = _round_up(B, tb)
    xp = _pad_axis(xp, 0, tb).astype(compute_dtype)
    grid_steps = B_pad // tb

    single_buffer_weights = _buffered1_supported()

    # ---- VMEM budget: what we actually need + headroom, capped per-chip.
    weight_bufs = 1 if single_buffer_weights else 2
    param_bytes = sum(int(p.size) * p.dtype.itemsize for p in flat_params)
    io_bytes = 2 * tb * (d_in_p * xp.dtype.itemsize
                         + d_out_p * jnp.dtype(out_dtype).itemsize)
    act_bytes = 4 * tb * (ws[0].shape[1] + ws[1].shape[1] + ws[2].shape[1])
    need = weight_bufs * param_bytes + io_bytes + act_bytes
    vmem_limit = int(1.25 * need) + (8 << 20)           # compiler scratch headroom
    vmem_cap = _vmem_capacity_bytes()
    vmem_limit = min(max(vmem_limit, 32 << 20), max(vmem_cap - (12 << 20), 16 << 20))

    # ---- Cost estimate (incl. bias reads) for the XLA scheduler.
    flops = 2 * B_pad * sum(w.shape[0] * w.shape[1] for w in ws)
    bytes_accessed = (int(xp.size) * xp.dtype.itemsize + param_bytes
                      + B_pad * d_out_p * jnp.dtype(out_dtype).itemsize)
    cost = pl.CostEstimate(flops=flops, transcendentals=0,
                           bytes_accessed=bytes_accessed)

    # ---- Megacore split only when the grid is big enough to amortize the
    #      duplicated resident-weight DMA per TensorCore (weight-bound at
    #      small batch on v7x).
    semantics = ("parallel",) if grid_steps >= 4 else ("arbitrary",)

    def const_spec(shape):
        # Grid-invariant block: fetched once; single-buffer when supported to
        # halve the resident weight VMEM footprint.
        if single_buffer_weights:
            return pl.BlockSpec(shape, lambda i: (0, 0),
                                pipeline_mode=pl.Buffered(1))
        return pl.BlockSpec(shape, lambda i: (0, 0))

    grid_spec = pltpu.PrefetchScalarGridSpec(
        num_scalar_prefetch=0,
        grid=(grid_steps,),
        in_specs=[pl.BlockSpec((tb, d_in_p), lambda i: (i, 0))]
                 + [const_spec(p.shape) for p in flat_params],
        out_specs=pl.BlockSpec((tb, d_out_p), lambda i: (i, 0)),
    )

    out = pl.pallas_call(
        mlp_kernel,
        out_shape=jax.ShapeDtypeStruct((B_pad, d_out_p), out_dtype),
        grid_spec=grid_spec,
        compiler_params=pltpu.CompilerParams(
            dimension_semantics=semantics,
            vmem_limit_bytes=vmem_limit),
        cost_estimate=cost,
    )(xp, *flat_params)

    return out[:B, :d_out]


# --------------------------------------------------------------------------
# Init + reference
# --------------------------------------------------------------------------
def init_params(key, input_size, hidden_size, output_size):
    """PyTorch-nn.Linear-like uniform fan-in init.  W stored as (in, out)."""
    dims = [
        (input_size, hidden_size),
        (hidden_size, hidden_size * 2),
        (hidden_size * 2, hidden_size),
        (hidden_size, output_size),
    ]
    params = {}
    for idx, (fan_in, fan_out) in enumerate(dims, start=1):
        key, kw, kb = jax.random.split(key, 3)
        bound = 1.0 / jnp.sqrt(fan_in)
        params[f"w{idx}"] = jax.random.uniform(
            kw, (fan_in, fan_out), jnp.float32, -bound, bound)
        params[f"b{idx}"] = jax.random.uniform(
            kb, (1, fan_out), jnp.float32, -bound, bound)
    return params


def linear_mlp_reference(x, params, compute_dtype=jnp.bfloat16):
    """Pure-JAX reference with the same bf16-operand / fp32-accum math."""
    def lin(h, w, b):
        return jnp.dot(h.astype(compute_dtype), w.astype(compute_dtype),
                       preferred_element_type=jnp.float32) + b.astype(jnp.float32)
    h = lin(x, params["w1"], params["b1"])
    h = lin(h, params["w2"], params["b2"])
    h = lin(h, params["w3"], params["b3"])
    return lin(h, params["w4"], params["b4"])


if __name__ == "__main__":
    # Scaled-down Linear_MLP config (real module: 768 -> 1024 -> 2048 -> 1024 -> 768).
    # Non-multiples of 128 exercise the feature/batch padding paths.
    batch = 48
    input_size, hidden_size, output_size = 96, 64, 80

    key = jax.random.PRNGKey(0)
    key, kx = jax.random.split(key)
    x = jax.random.normal(kx, (batch, input_size), jnp.float32)
    params = init_params(key, input_size, hidden_size, output_size)

    prepared = prepare_params(params)          # one-time pad + bf16 cast
    out = linear_mlp_forward(x, prepared)
    out = jax.block_until_ready(out)

    ref = linear_mlp_reference(x, params)
    assert out.shape == (batch, output_size)
    assert jnp.allclose(out, ref, atol=2e-2, rtol=2e-2), "mismatch vs JAX reference"

    print("KERNEL_OK")
</pallas_src>

<mosaic_0001>
module attributes {stable_mosaic.version = 11 : i64} {
  func.func @probe(%arg0: i32, %arg1: memref<8x128xf32, #tpu.memory_space<vmem>>, %arg2: memref<8x128xf32, #tpu.memory_space<vmem>>) attributes {dimension_semantics = [#tpu.dimension_semantics<arbitrary>], iteration_bounds = array<i64: 2>, scalar_prefetch = 0 : i64, scratch_operands = 0 : i64, tpu.core_type = #tpu.core_type<tc>, window_params = [{pipeline_mode = #tpu.pipeline_mode<synchronous>, transform_indices = @transform_0, window_bounds = array<i64: 8, 128>}, {transform_indices = @transform_1, window_bounds = array<i64: 8, 128>}]} {
    %c0 = arith.constant 0 : index
    %c0_0 = arith.constant 0 : index
    %0 = vector.load %arg1[%c0, %c0_0] : memref<8x128xf32, #tpu.memory_space<vmem>>, vector<8x128xf32>
    %c0_1 = arith.constant 0 : index
    %c0_2 = arith.constant 0 : index
    %1 = vector.load %arg2[%c0_1, %c0_2] : memref<8x128xf32, #tpu.memory_space<vmem>>, vector<8x128xf32>
    tpu.vector_store %arg2[%c0_1, %c0_2], %0 {strides = array<i32>} : memref<8x128xf32, #tpu.memory_space<vmem>>, vector<8x128xf32>,
    return
  }
  func.func @transform_0(%arg0: i32) -> (i32, i32) {
    %c0_i32 = arith.constant 0 : i32
    %c0_i32_0 = arith.constant 0 : i32
    %c0_i32_1 = arith.constant 0 : i32
    return %c0_i32, %c0_i32_0 : i32, i32
  }
  func.func @transform_1(%arg0: i32) -> (i32, i32) {
    %c0_i32 = arith.constant 0 : i32
    %c0_i32_0 = arith.constant 0 : i32
    return %arg0, %c0_i32 : i32, i32
  }
}

module attributes {stable_mosaic.version = 11 : i64} {
  func.func @mlp_kernel(%arg0: i32, %arg1: memref<48x128xbf16, #tpu.memory_space<vmem>>, %arg2: memref<128x128xbf16, #tpu.memory_space<vmem>>, %arg3: memref<1x128xf32, #tpu.memory_space<vmem>>, %arg4: memref<128x128xbf16, #tpu.memory_space<vmem>>, %arg5: memref<1x128xf32, #tpu.memory_space<vmem>>, %arg6: memref<128x128xbf16, #tpu.memory_space<vmem>>, %arg7: memref<1x128xf32, #tpu.memory_space<vmem>>, %arg8: memref<128x128xbf16, #tpu.memory_space<vmem>>, %arg9: memref<1x128xf32, #tpu.memory_space<vmem>>, %arg10: memref<48x128xf32, #tpu.memory_space<vmem>>) attributes {dimension_semantics = [#tpu.dimension_semantics<arbitrary>], iteration_bounds = array<i64: 1>, scalar_prefetch = 0 : i64, scratch_operands = 0 : i64, tpu.core_type = #tpu.core_type<tc>, window_params = [{transform_indices = @transform_0, window_bounds = array<i64: 48, 128>}, {pipeline_mode = #tpu.pipeline_mode<synchronous>, transform_indices = @transform_1, window_bounds = array<i64: 128, 128>}, {pipeline_mode = #tpu.pipeline_mode<synchronous>, transform_indices = @transform_2, window_bounds = array<i64: 1, 128>}, {pipeline_mode = #tpu.pipeline_mode<synchronous>, transform_indices = @transform_3, window_bounds = array<i64: 128, 128>}, {pipeline_mode = #tpu.pipeline_mode<synchronous>, transform_indices = @transform_4, window_bounds = array<i64: 1, 128>}, {pipeline_mode = #tpu.pipeline_mode<synchronous>, transform_indices = @transform_5, window_bounds = array<i64: 128, 128>}, {pipeline_mode = #tpu.pipeline_mode<synchronous>, transform_indices = @transform_6, window_bounds = array<i64: 1, 128>}, {pipeline_mode = #tpu.pipeline_mode<synchronous>, transform_indices = @transform_7, window_bounds = array<i64: 128, 128>}, {pipeline_mode = #tpu.pipeline_mode<synchronous>, transform_indices = @transform_8, window_bounds = array<i64: 1, 128>}, {transform_indices = @transform_9, window_bounds = array<i64: 48, 128>}]} {
    %c0 = arith.constant 0 : index
    %c0_0 = arith.constant 0 : index
    %0 = vector.load %arg1[%c0, %c0_0] : memref<48x128xbf16, #tpu.memory_space<vmem>>, vector<48x128xbf16>
    %c0_1 = arith.constant 0 : index
    %c0_2 = arith.constant 0 : index
    %1 = vector.load %arg2[%c0_1, %c0_2] : memref<128x128xbf16, #tpu.memory_space<vmem>>, vector<128x128xbf16>
    %cst = arith.constant dense<0.000000e+00> : vector<48x128xf32>
    %2 = tpu.matmul %0, %1, %cst {dimension_numbers = #tpu.dot_dimension_numbers<[1], [0], [0], [1], [0, 0, 1, 1], [], []>} : vector<48x128xbf16>, vector<128x128xbf16>, vector<48x128xf32> -> vector<48x128xf32>
    %c0_3 = arith.constant 0 : index
    %c0_4 = arith.constant 0 : index
    %3 = vector.load %arg3[%c0_3, %c0_4] : memref<1x128xf32, #tpu.memory_space<vmem>>, vector<1x128xf32>
    %4 = vector.broadcast %3 : vector<1x128xf32> to vector<48x128xf32>
    %5 = arith.addf %2, %4 : vector<48x128xf32>
    %6 = arith.truncf %5 : vector<48x128xf32> to vector<48x128xbf16>
    %c0_5 = arith.constant 0 : index
    %c0_6 = arith.constant 0 : index
    %7 = vector.load %arg4[%c0_5, %c0_6] : memref<128x128xbf16, #tpu.memory_space<vmem>>, vector<128x128xbf16>
    %cst_7 = arith.constant dense<0.000000e+00> : vector<48x128xf32>
    %8 = tpu.matmul %6, %7, %cst_7 {dimension_numbers = #tpu.dot_dimension_numbers<[1], [0], [0], [1], [0, 0, 1, 1], [], []>} : vector<48x128xbf16>, vector<128x128xbf16>, vector<48x128xf32> -> vector<48x128xf32>
    %c0_8 = arith.constant 0 : index
    %c0_9 = arith.constant 0 : index
    %9 = vector.load %arg5[%c0_8, %c0_9] : memref<1x128xf32, #tpu.memory_space<vmem>>, vector<1x128xf32>
    %10 = vector.broadcast %9 : vector<1x128xf32> to vector<48x128xf32>
    %11 = arith.addf %8, %10 : vector<48x128xf32>
    %12 = arith.truncf %11 : vector<48x128xf32> to vector<48x128xbf16>
    %c0_10 = arith.constant 0 : index
    %c0_11 = arith.constant 0 : index
    %13 = vector.load %arg6[%c0_10, %c0_11] : memref<128x128xbf16, #tpu.memory_space<vmem>>, vector<128x128xbf16>
    %cst_12 = arith.constant dense<0.000000e+00> : vector<48x128xf32>
    %14 = tpu.matmul %12, %13, %cst_12 {dimension_numbers = #tpu.dot_dimension_numbers<[1], [0], [0], [1], [0, 0, 1, 1], [], []>} : vector<48x128xbf16>, vector<128x128xbf16>, vector<48x128xf32> -> vector<48x128xf32>
    %c0_13 = arith.constant 0 : index
    %c0_14 = arith.constant 0 : index
    %15 = vector.load %arg7[%c0_13, %c0_14] : memref<1x128xf32, #tpu.memory_space<vmem>>, vector<1x128xf32>
    %16 = vector.broadcast %15 : vector<1x128xf32> to vector<48x128xf32>
    %17 = arith.addf %14, %16 : vector<48x128xf32>
    %18 = arith.truncf %17 : vector<48x128xf32> to vector<48x128xbf16>
    %c0_15 = arith.constant 0 : index
    %c0_16 = arith.constant 0 : index
    %19 = vector.load %arg8[%c0_15, %c0_16] : memref<128x128xbf16, #tpu.memory_space<vmem>>, vector<128x128xbf16>
    %cst_17 = arith.constant dense<0.000000e+00> : vector<48x128xf32>
    %20 = tpu.matmul %18, %19, %cst_17 {dimension_numbers = #tpu.dot_dimension_numbers<[1], [0], [0], [1], [0, 0, 1, 1], [], []>} : vector<48x128xbf16>, vector<128x128xbf16>, vector<48x128xf32> -> vector<48x128xf32>
    %c0_18 = arith.constant 0 : index
    %c0_19 = arith.constant 0 : index
    %21 = vector.load %arg9[%c0_18, %c0_19] : memref<1x128xf32, #tpu.memory_space<vmem>>, vector<1x128xf32>
    %22 = vector.broadcast %21 : vector<1x128xf32> to vector<48x128xf32>
    %23 = arith.addf %20, %22 : vector<48x128xf32>
    %c0_20 = arith.constant 0 : index
    %c0_21 = arith.constant 0 : index
    %24 = vector.load %arg10[%c0_20, %c0_21] : memref<48x128xf32, #tpu.memory_space<vmem>>, vector<48x128xf32>
    tpu.vector_store %arg10[%c0_20, %c0_21], %23 {strides = array<i32>} : memref<48x128xf32, #tpu.memory_space<vmem>>, vector<48x128xf32>,
    return
  }
  func.func @transform_0(%arg0: i32) -> (i32, i32) {
    %c0_i32 = arith.constant 0 : i32
    %c0_i32_0 = arith.constant 0 : i32
    return %arg0, %c0_i32 : i32, i32
  }
  func.func @transform_1(%arg0: i32) -> (i32, i32) {
    %c0_i32 = arith.constant 0 : i32
    %c0_i32_0 = arith.constant 0 : i32
    %c0_i32_1 = arith.constant 0 : i32
    return %c0_i32, %c0_i32_0 : i32, i32
  }
  func.func @transform_2(%arg0: i32) -> (i32, i32) {
    %c0_i32 = arith.constant 0 : i32
    %c0_i32_0 = arith.constant 0 : i32
    %c0_i32_1 = arith.constant 0 : i32
    return %c0_i32, %c0_i32_0 : i32, i32
  }
  func.func @transform_3(%arg0: i32) -> (i32, i32) {
    %c0_i32 = arith.constant 0 : i32
    %c0_i32_0 = arith.constant 0 : i32
    %c0_i32_1 = arith.constant 0 : i32
    return %c0_i32, %c0_i32_0 : i32, i32
  }
  func.func @transform_4(%arg0: i32) -> (i32, i32) {
    %c0_i32 = arith.constant 0 : i32
    %c0_i32_0 = arith.constant 0 : i32
    %c0_i32_1 = arith.constant 0 : i32
    return %c0_i32, %c0_i32_0 : i32, i32
  }
  func.func @transform_5(%arg0: i32) -> (i32, i32) {
    %c0_i32 = arith.constant 0 : i32
    %c0_i32_0 = arith.constant 0 : i32
    %c0_i32_1 = arith.constant 0 : i32
    return %c0_i32, %c0_i32_0 : i32, i32
  }
  func.func @transform_6(%arg0: i32) -> (i32, i32) {
    %c0_i32 = arith.constant 0 : i32
    %c0_i32_0 = arith.constant 0 : i32
    %c0_i32_1 = arith.constant 0 : i32
    return %c0_i32, %c0_i32_0 : i32, i32
  }
  func.func @transform_7(%arg0: i32) -> (i32, i32) {
    %c0_i32 = arith.constant 0 : i32
    %c0_i32_0 = arith.constant 0 : i32
    %c0_i32_1 = arith.constant 0 : i32
    return %c0_i32, %c0_i32_0 : i32, i32
  }
  func.func @transform_8(%arg0: i32) -> (i32, i32) {
    %c0_i32 = arith.constant 0 : i32
    %c0_i32_0 = arith.constant 0 : i32
    %c0_i32_1 = arith.constant 0 : i32
    return %c0_i32, %c0_i32_0 : i32, i32
  }
  func.func @transform_9(%arg0: i32) -> (i32, i32) {
    %c0_i32 = arith.constant 0 : i32
    %c0_i32_0 = arith.constant 0 : i32
    return %arg0, %c0_i32 : i32, i32
  }
}

</mosaic_0001>

<bundles_post_ra>
// kernel: tpu_custom_call.1
= control target key start
LH: loop header
LB: loop body
LE: loop exit
PB: predicated region body
PF: predicated region fallthrough
CT: control target
= control target key end

     0   :  { %6 = vsyncpa [#allocation3], 0  ;;  %s440_s0 = inlined_call_operand.hbm [shape: f32[8,128], index: 0, kind: input, shape index: {}]   ;;  %s441_s1 = inlined_call_operand.hbm [shape: f32[16,128], index: 1, kind: output, shape index: {}]  }
   0x1   :  { %7 = vsyncpa [#allocation4], 0 }
   0x2   :  { %9 = vsyncpa [#allocation4 + $0x1], 0  ;;  %s356_s6 = smov 0   ;;  %s358_s7 = smov 0  }
   0x3   :  { %s360_s8 = smov 0   ;;  %s362_s9 = smov 0  }
   0x4 LB: > { %s377_s10 = sadd.s32 4294967295, %s343_s9   ;;  %s187_s11 = sadd.s32 4294967294, %s343_s9   ;;  %s343_s9 = sphi %s362_s9, %s447_s9   ;;  %s339_s8 = sphi %s360_s8, %s446_s8   ;;  %s335_s7 = sphi %s358_s7, %s445_s7   ;;  %s331_s6 = sphi %s356_s6, %s444_s6  }
   0x5   : > { %s381_s12 = sadd.s32 1, %s343_s9   ;;  %s43_s13 = sadd.s32 1, %s339_s8 }
   0x6   : > { %s40_s14 = ssub.s32 %s343_s9, %s381_s12  ;;  %p53_p0 = scmp.ne.s32.totalorder %s339_s8, %s335_s7 }
   0x7   : > { %p41_p1 = scmp.eq.s32.totalorder %s40_s14, 0  ;;  %p54_p2 = scmp.eq.s32.totalorder %s377_s10, 1 }
   0x8   : > { %p59_p3 = scmp.ne.s32.totalorder %s335_s7, %s331_s6  ;;  %p60_p4 = scmp.eq.s32.totalorder %s187_s11, 1 }
   0x9   : > { %s392_s15 = scalar_select %p41_p1, %s339_s8, %s43_s13  }
   0xa   : > { %p394_p5 = por %p54_p2, %p53_p0  ;;  %p398_p6 = por %p60_p4, %p59_p3 }
   0xb   : > { %p188_p7 = scmp.ge.s32.totalorder %s343_s9, 1  ;;  %p67_p8 = scmp.lt.s32.totalorder %s343_s9, 3 }
   0xc   : > { %p211_p9 = scmp.eq.s32.totalorder %s377_s10, 0  ;;  %s79_s20 = sshll.u32 %s440_s0, 4  ;;  %s80_s20 = int_to_ptr.hbm [resolvable:$true] %s79_s20 }
   0xd   : > { %p68_p10 = pnand %p188_p7, %p67_p8  ;;  %s345_s21 = smov [#allocation2]  }
   0xe   : > { %s81_s22 = sshll.u32 %s345_s21, 4  ;;  %s82_s22 = int_to_ptr.vmem [resolvable:$true] %s81_s22 }
   0xf   : > { %p203_p11 = pneg %p68_p10  ;;  %94 = sbr.rel (%p68_p10) target bundleno = 37 (0x25), region = 24 }
  0x11   : > { %p204_p12 = pnand %p211_p9, %p203_p11 }
  0x13   : > { %206 = dma.hbm_to_vmem [thread:$0]  (!%p204_p12), %s80_s20, 128, %s82_s22, [#allocation3]  }
  0x14   : > { %322 = dma.done.wait (%p211_p9), [#allocation3], 128  }
  0x15   : > { %324 = vsyncadd (%p211_p9), [#allocation3], 4294967168  ;;  %s107_s23 = sand.u32 1, %s335_s7   ;;  %s194_s24 = sshll.u32 %s377_s10, 3  ;;  %v110_v0 = vld [vmem:[#allocation2] sm:$0xff] }
  0x16   : > { %s192_s25 = sshll.u32 %s107_s23, 3  ;;  %s123_s28 = scalar_lea.hbm %s441_s1, %s194_s24 }
  0x17   : > { %s109_s29 = scalar_lea.vmem [#allocation5], %s192_s25  ;;  %s127_s2 = sshll.u32 %s123_s28, 4  ;;  %s128_s2 = int_to_ptr.hbm [resolvable:$true] %s127_s2 }
  0x18   : > { %s125_s30 = sshll.u32 %s109_s29, 4  ;;  %111 = vst [vmem:[%s109_s29] sm:$0xff] %v110_v0  ;;  %s113_s3 = scalar_lea.sflag [#allocation4], %s107_s23  ;;  %s126_s30 = int_to_ptr.vmem [resolvable:$true] %s125_s30 }
  0x19   : > { %s291_s4 = sshra.s32 %s128_s2, 4  ;;  %s297_s13 = scalar_lea.hbm %s441_s1, 16  ;;  %s292_s4 = int_to_ptr.hbm [resolvable:$true] %s291_s4 }
  0x1a   : > { %s293_s5 = scalar_lea.hbm %s292_s4, 8  ;;  %p298_p2 = scmp.lt.s32.totalorder %s292_s4, %s441_s1 }
  0x1b   : > { %p294_p13 = scmp.ne.s32.totalorder %s292_s4, %s293_s5  ;;  %p299_p3 = scmp.lt.s32.totalorder %s297_s13, %s293_s5 }
  0x1d   : > { %p295_p0 = pnand %p294_p13, %p394_p5  ;;  %p300_p4 = por %p299_p3, %p298_p2 }
  0x1f   : > { %p296_p1 = pneg %p295_p0 }
  0x21   : > { %p301_p7 = pnand %p300_p4, %p296_p1 }
  0x23   : > { %304 = shalt.err (!%p301_p7)
}
  0x24   : > { %201 = dma.vmem_to_hbm [thread:$0]  (%p394_p5), %s126_s30, 128, %s128_s2, %s113_s3  }
  0x25 PF: > { %p213_p8 = scmp.ge.s32.totalorder %s343_s9, 2  ;;  %s139_s19 = sand.u32 1, %s331_s6  }
  0x26   : > { %s140_s20 = scalar_lea.sflag [#allocation4], %s139_s19 }
  0x27   : > { %p208_p9 = pnand %p213_p8, %p398_p6 }
  0x29   : > { %p209_p10 = pneg %p208_p9 }
  0x2b   : > { %326 = dma.done.wait (%p209_p10), %s140_s20, 128  }
  0x2c   : > { %328 = vsyncadd (%p209_p10), %s140_s20, 4294967168  ;;  %p12_p11 = scmp.ge.s32.totalorder %s381_s12, 4   ;;  %s444_s6 = smov %s335_s7 }
  0x2d   : > { %s445_s7 = smov %s339_s8  ;;  %s446_s8 = smov %s392_s15 }
  0x2e   : > { %s447_s9 = smov %s381_s12  ;;  %14 = sbr.rel (!%p12_p11) target bundleno = 4 (0x4), region = 61 }
  0x33   :  { %146 = vsyncpa [#allocation3], 1 }
  0x34   :  { %148 = vsyncpa [#allocation3 + $0x1], 1 }
  0x35   :  { %149 = vsyncpa [#allocation4], 1 }
  0x36   :  { %151 = vsyncpa [#allocation4 + $0x1], 1 }

// kernel: tpu_custom_call.1
= control target key start
LH: loop header
LB: loop body
LE: loop exit
PB: predicated region body
PF: predicated region fallthrough
CT: control target
= control target key end

     0   :  { %14 = vsyncpa [#allocation3], 0  ;;  %s970_s0 = inlined_call_operand.hbm [shape: bf16[48,128], index: 0, kind: input, shape index: {}]   ;;  %s971_s1 = inlined_call_operand.hbm [shape: bf16[128,128], index: 1, kind: input, shape index: {}]   ;;  %s972_s2 = inlined_call_operand.vmem [shape: f32[1,128], index: 2, kind: input, shape index: {}]   ;;  %s973_s3 = inlined_call_operand.hbm [shape: bf16[128,128], index: 3, kind: input, shape index: {}]   ;;  %s974_s4 = inlined_call_operand.vmem [shape: f32[1,128], index: 4, kind: input, shape index: {}]   ;;  %s975_s5 = inlined_call_operand.hbm [shape: bf16[128,128], index: 5, kind: input, shape index: {}]   ;;  %s976_s6 = inlined_call_operand.vmem [shape: f32[1,128], index: 6, kind: input, shape index: {}]   ;;  %s977_s7 = inlined_call_operand.hbm [shape: bf16[128,128], index: 7, kind: input, shape index: {}]   ;;  %s978_s8 = inlined_call_operand.vmem [shape: f32[1,128], index: 8, kind: input, shape index: {}]   ;;  %s979_s9 = inlined_call_operand.hbm [shape: f32[48,128], index: 9, kind: output, shape index: {}]  }
   0x1   :  { %15 = vsyncpa [#allocation6], 0 }
   0x2   :  { %16 = vsyncpa [#allocation9], 0 }
   0x3   :  { %17 = vsyncpa [#allocation4], 0  ;;  %s35_s11 = sshll.u32 %s971_s1, 4  ;;  %s880_s12 = smov [#allocation5]   ;;  %s36_s11 = int_to_ptr.hbm [resolvable:$true] %s35_s11 }
   0x4   :  { %s37_s13 = sshll.u32 %s880_s12, 4  ;;  %s65_s16 = sshll.u32 %s975_s5, 4  ;;  %s38_s13 = int_to_ptr.vmem [resolvable:$true] %s37_s13  ;;  %s66_s16 = int_to_ptr.hbm [resolvable:$true] %s65_s16 }
   0x5   :  { %s881_s17 = smov 64   ;;  %s882_s18 = smov 4  }
   0x6   :  { %43 = dma.hbm_to_vmem [thread:$0]  %s36_s11, 1024, %s38_s13, [#allocation6], %s881_s17, %s881_s17, %s882_s18  }
   0x7   :  { %s883_s19 = smov [#allocation8]   ;;  %s22_s23 = sshll.u32 %s970_s0, 4  ;;  %s23_s23 = int_to_ptr.hbm [resolvable:$true] %s22_s23 }
   0x8   :  { %s67_s20 = sshll.u32 %s883_s19, 4  ;;  %s50_s25 = sshll.u32 %s973_s3, 4  ;;  %s68_s20 = int_to_ptr.vmem [resolvable:$true] %s67_s20  ;;  %s51_s25 = int_to_ptr.hbm [resolvable:$true] %s50_s25 }
   0x9   :  { %73 = dma.hbm_to_vmem [thread:$0]  %s66_s16, 1024, %s68_s20, [#allocation9], %s881_s17, %s881_s17, %s882_s18  }
   0xa   :  { %s884_s26 = smov [#allocation2]   ;;  %s885_s5 = smov [#allocation7]  }
   0xb   :  { %s24_s27 = sshll.u32 %s884_s26, 4  ;;  %s52_s28 = sshll.u32 %s885_s5, 4  ;;  %s25_s27 = int_to_ptr.vmem [resolvable:$true] %s24_s27  ;;  %s53_s28 = int_to_ptr.vmem [resolvable:$true] %s52_s28 }
   0xc   :  { %30 = dma.hbm_to_vmem [thread:$0]  %s23_s23, 384, %s25_s27, [#allocation3], %s881_s17, %s881_s17, %s882_s18  }
   0xd   :  { %s80_s10 = sshll.u32 %s977_s7, 4  ;;  %s886_s0 = smov [#allocation10]   ;;  %s81_s10 = int_to_ptr.hbm [resolvable:$true] %s80_s10 }
   0xe   :  { %58 = dma.hbm_to_vmem [thread:$0]  %s51_s25, 1024, %s53_s28, [#allocation6], %s881_s17, %s881_s17, %s882_s18  }
   0xf   :  { %s82_s11 = sshll.u32 %s886_s0, 4  ;;  %s83_s11 = int_to_ptr.vmem [resolvable:$true] %s82_s11 }
  0x10   :  { %88 = dma.hbm_to_vmem [thread:$0]  %s81_s10, 1024, %s83_s11, [#allocation9], %s881_s17, %s881_s17, %s882_s18  }
  0x11   :  { %872 = dma.done.wait [#allocation3], 384  }
  0x12   :  { %873 = vsyncadd [#allocation3], 4294966912 }
  0x13   :  { %874 = dma.done.wait [#allocation6], 2048  }
  0x14   :  { %875 = vsyncadd [#allocation6], 4294965248 }
  0x15   :  { %876 = dma.done.wait [#allocation9], 2048  }
  0x16   :  { %877 = vsyncadd [#allocation9], 4294965248  ;;  %v689_v0 = vld [vmem:[#allocation5 + $0x38] sm:$0xff]  ;;  %v688_v1 = vld [vmem:[#allocation5 + $0x30] sm:$0xff]  ;;  %s888_s19 = smov 128   ;;  %s889_s20 = smov 8  }
  0x17   :  { %203 = vmatpush.bf16.msra.mxu0 %v689_v0  ;;  %v687_v2 = vld [vmem:[#allocation5 + $0x28] sm:$0xff]  ;;  %v686_v3 = vld [vmem:[#allocation5 + $0x20] sm:$0xff]  ;;  %v685_v4 = vld [vmem:[#allocation5 + $0x18] sm:$0xff] }
  0x18   :  { %v684_v5 = vld [vmem:[#allocation5 + $0x10] sm:$0xff]  ;;  %v683_v6 = vld [vmem:[#allocation5 + $0x8] sm:$0xff]  ;;  %v682_v7 = vld [vmem:[#allocation5] sm:$0xff] }
  0x19   :  { %v679_v8 = vld [vmem:[#allocation2] sm:$0xff]  ;;  %v697_v9 = vld [vmem:[#allocation7 + $0x38] sm:$0xff]  ;;  %v696_v10 = vld [vmem:[#allocation7 + $0x30] sm:$0xff] }
  0x1a   :  { %298 = vmatpush.bf16.msra.mxu1 %v697_v9  ;;  %v695_v11 = vld [vmem:[#allocation7 + $0x28] sm:$0xff]  ;;  %v694_v12 = vld [vmem:[#allocation7 + $0x20] sm:$0xff]  ;;  %v680_v13 = vld [vmem:[#allocation2 + $0x8] sm:$0xff] }
  0x1b   :  { %204 = vmatpush.bf16.msra.mxu0 %v688_v1  ;;  %v693_v14 = vld [vmem:[#allocation7 + $0x18] sm:$0xff]  ;;  %v692_v16 = vld [vmem:[#allocation7 + $0x10] sm:$0xff]  ;;  %v691_v17 = vld [vmem:[#allocation7 + $0x8] sm:$0xff] }
  0x1c   :  { %v681_v15 = vld [vmem:[#allocation2 + $0x10] sm:$0xff]  ;;  %v690_v18 = vld [vmem:[#allocation7] sm:$0xff]  ;;  %v724_v20 = vld [vmem:[%s972_s2] ss:$0 sm:$0xff] }
  0x1d   :  { %v705_v25 = vld [vmem:[#allocation8 + $0x38] sm:$0xff]  ;;  %v704_v26 = vld [vmem:[#allocation8 + $0x30] sm:$0xff]  ;;  %v703_v28 = vld [vmem:[#allocation8 + $0x28] sm:$0xff] }
  0x1e   :  { %299 = vmatpush.bf16.msra.mxu1 %v696_v10  ;;  %393 = vmatpush.bf16.msra.mxu2 %v705_v25  ;;  %v702_v29 = vld [vmem:[#allocation8 + $0x20] sm:$0xff]  ;;  %v701_v34 = vld [vmem:[#allocation8 + $0x18] sm:$0xff]  ;;  %v700_v40 = vld [vmem:[#allocation8 + $0x10] sm:$0xff] }
  0x1f   :  { %205 = vmatpush.bf16.msra.mxu0 %v687_v2  ;;  %v699_v41 = vld [vmem:[#allocation8 + $0x8] sm:$0xff]  ;;  %v698_v42 = vld [vmem:[#allocation8] sm:$0xff]  ;;  %v713_v49 = vld [vmem:[#allocation10 + $0x38] sm:$0xff] }
  0x20   :  { %v725_v44 = vld [vmem:[%s974_s4] ss:$0 sm:$0xff]  ;;  %488 = vmatpush.bf16.msra.mxu3 %v713_v49  ;;  %v712_v50 = vld [vmem:[#allocation10 + $0x30] sm:$0xff]  ;;  %v710_v53 = vld [vmem:[#allocation10 + $0x20] sm:$0xff] }
  0x21   :  { %v711_v52 = vld [vmem:[#allocation10 + $0x28] sm:$0xff]  ;;  %v709_v58 = vld [vmem:[#allocation10 + $0x18] sm:$0xff]  ;;  %v708_v0 = vld [vmem:[#allocation10 + $0x10] sm:$0xff] }
  0x22   :  { %300 = vmatpush.bf16.msra.mxu1 %v695_v11  ;;  %394 = vmatpush.bf16.msra.mxu2 %v704_v26  ;;  %v707_v1 = vld [vmem:[#allocation10 + $0x8] sm:$0xff]  ;;  %v706_v2 = vld [vmem:[#allocation10] sm:$0xff] }
  0x23   :  { %206 = vmatpush.bf16.msra.mxu0 %v686_v3 }
  0x24   :  { %489 = vmatpush.bf16.msra.mxu3 %v712_v50 }
  0x26   :  { %301 = vmatpush.bf16.msra.mxu1 %v694_v12  ;;  %395 = vmatpush.bf16.msra.mxu2 %v703_v28 }
  0x27   :  { %207 = vmatpush.bf16.msra.mxu0 %v685_v4  ;;  %v726_v4 = vld [vmem:[%s976_s6] ss:$0 sm:$0xff]  ;;  %s887_s6 = smov [#allocation11]  }
  0x28   :  { %490 = vmatpush.bf16.msra.mxu3 %v711_v52  ;;  %s522_s16 = sshll.u32 %s887_s6, 4  ;;  %s523_s16 = int_to_ptr.vmem [resolvable:$true] %s522_s16 }
  0x2a   :  { %302 = vmatpush.bf16.msra.mxu1 %v693_v14  ;;  %396 = vmatpush.bf16.msra.mxu2 %v702_v29 }
  0x2b   :  { %208 = vmatpush.bf16.msra.mxu0 %v684_v5 }
  0x2c   :  { %491 = vmatpush.bf16.msra.mxu3 %v710_v53 }
  0x2e   :  { %303 = vmatpush.bf16.msra.mxu1 %v692_v16  ;;  %397 = vmatpush.bf16.msra.mxu2 %v701_v34 }
  0x2f   :  { %209 = vmatpush.bf16.msra.mxu0 %v683_v6 }
  0x30   :  { %492 = vmatpush.bf16.msra.mxu3 %v709_v58 }
  0x32   :  { %304 = vmatpush.bf16.msra.mxu1 %v691_v17  ;;  %398 = vmatpush.bf16.msra.mxu2 %v700_v40 }
  0x33   :  { %210 = vmatpush.bf16.msra.mxu0 %v682_v7 }
  0x34   :  { %493 = vmatpush.bf16.msra.mxu3 %v708_v0 }
  0x36   :  { %211 = vmatmul.bf16.vlgmr.msra.gmra.mxu0 %v679_v8  ;;  %305 = vmatpush.bf16.msra.mxu1 %v690_v18 }
  0x37   :  { %399 = vmatpush.bf16.msra.mxu2 %v699_v41 }
  0x38   :  { %494 = vmatpush.bf16.msra.mxu3 %v707_v1 }
  0x3b   :  { %400 = vmatpush.bf16.msra.mxu2 %v698_v42 }
  0x3c   :  { %495 = vmatpush.bf16.msra.mxu3 %v706_v2 }
  0x46   :  { %216 = vmatmul.bf16.gmra.mxu0 %v680_v13 }
  0x56   :  { %221 = vmatmul.bf16.gmra.mxu0 %v681_v15 }
  0xb3   :  { %v212_v19 = vpop.f32.mrf.mxu0 }
  0xb4   :  { %v213_v22 = vadd.f32 %v724_v20, %v212_v19  ;;  %v727_v19 = vld [vmem:[%s978_s8] ss:$0 sm:$0xff]  ;;  %s524_s8 = sshll.u32 %s979_s9, 4  ;;  %s525_s8 = int_to_ptr.hbm [resolvable:$true] %s524_s8 }
  0xbb   :  { %v214_v21 = vpop.f32.mrf.mxu0 }
  0xbc   :  { %v215_v23 = vadd.f32 %v724_v20, %v214_v21 }
  0xbe   :  { %v227_v24 = vpack.c.bf16 %v215_v23, %v213_v22 }
  0xc0   :  { %306 = vmatmul.bf16.vlgmr.msra.gmra.mxu1 %v227_v24 }
  0xc3   :  { %v217_v27 = vpop.f32.mrf.mxu0 }
  0xc4   :  { %v218_v31 = vadd.f32 %v724_v20, %v217_v27 }
  0xcb   :  { %v219_v30 = vpop.f32.mrf.mxu0 }
  0xcc   :  { %v220_v32 = vadd.f32 %v724_v20, %v219_v30 }
  0xce   :  { %v228_v33 = vpack.c.bf16 %v220_v32, %v218_v31 }
  0xd0   :  { %311 = vmatmul.bf16.gmra.mxu1 %v228_v33 }
  0xd3   :  { %v222_v35 = vpop.f32.mrf.mxu0 }
  0xd4   :  { %v223_v37 = vadd.f32 %v724_v20, %v222_v35 }
  0xdb   :  { %v224_v36 = vpop.f32.mrf.mxu0 }
  0xdc   :  { %v225_v38 = vadd.f32 %v724_v20, %v224_v36 }
  0xde   :  { %v229_v39 = vpack.c.bf16 %v225_v38, %v223_v37 }
  0xe0   :  { %316 = vmatmul.bf16.gmra.mxu1 %v229_v39 }
 0x13d   :  { %v307_v43 = vpop.f32.mrf.mxu1 }
 0x13e   :  { %v308_v46 = vadd.f32 %v725_v44, %v307_v43 }
 0x145   :  { %v309_v45 = vpop.f32.mrf.mxu1 }
 0x146   :  { %v310_v47 = vadd.f32 %v725_v44, %v309_v45 }
 0x148   :  { %v322_v48 = vpack.c.bf16 %v310_v47, %v308_v46 }
 0x14a   :  { %401 = vmatmul.bf16.vlgmr.msra.gmra.mxu2 %v322_v48 }
 0x14d   :  { %v312_v51 = vpop.f32.mrf.mxu1 }
 0x14e   :  { %v313_v55 = vadd.f32 %v725_v44, %v312_v51 }
 0x155   :  { %v314_v54 = vpop.f32.mrf.mxu1 }
 0x156   :  { %v315_v56 = vadd.f32 %v725_v44, %v314_v54 }
 0x158   :  { %v323_v57 = vpack.c.bf16 %v315_v56, %v313_v55 }
 0x15a   :  { %406 = vmatmul.bf16.gmra.mxu2 %v323_v57 }
 0x15d   :  { %v317_v59 = vpop.f32.mrf.mxu1 }
 0x15e   :  { %v318_v61 = vadd.f32 %v725_v44, %v317_v59 }
 0x165   :  { %v319_v60 = vpop.f32.mrf.mxu1 }
 0x166   :  { %v320_v62 = vadd.f32 %v725_v44, %v319_v60 }
 0x168   :  { %v324_v63 = vpack.c.bf16 %v320_v62, %v318_v61 }
 0x16a   :  { %411 = vmatmul.bf16.gmra.mxu2 %v324_v63 }
 0x1cd   :  { %v402_v3 = vpop.f32.mrf.mxu2 }
 0x1ce   :  { %v403_v6 = vadd.f32 %v726_v4, %v402_v3 }
 0x1d5   :  { %v404_v5 = vpop.f32.mrf.mxu2 }
 0x1d6   :  { %v405_v7 = vadd.f32 %v726_v4, %v404_v5 }
 0x1d8   :  { %v417_v8 = vpack.c.bf16 %v405_v7, %v403_v6 }
 0x1da   :  { %496 = vmatmul.bf16.vlgmr.msra.gmra.mxu3 %v417_v8 }
 0x1dd   :  { %v407_v9 = vpop.f32.mrf.mxu2 }
 0x1de   :  { %v408_v11 = vadd.f32 %v726_v4, %v407_v9 }
 0x1e5   :  { %v409_v10 = vpop.f32.mrf.mxu2 }
 0x1e6   :  { %v410_v12 = vadd.f32 %v726_v4, %v409_v10 }
 0x1e8   :  { %v418_v13 = vpack.c.bf16 %v410_v12, %v408_v11 }
 0x1ea   :  { %501 = vmatmul.bf16.gmra.mxu3 %v418_v13 }
 0x1ed   :  { %v412_v14 = vpop.f32.mrf.mxu2 }
 0x1ee   :  { %v413_v16 = vadd.f32 %v726_v4, %v412_v14 }
 0x1f5   :  { %v414_v15 = vpop.f32.mrf.mxu2 }
 0x1f6   :  { %v415_v17 = vadd.f32 %v726_v4, %v414_v15 }
 0x1f8   :  { %v419_v18 = vpack.c.bf16 %v415_v17, %v413_v16 }
 0x1fa   :  { %506 = vmatmul.bf16.gmra.mxu3 %v419_v18 }
 0x25d   :  { %v497_v20 = vpop.f32.mrf.mxu3 }
 0x25e   :  { %v498_v21 = vadd.f32 %v727_v19, %v497_v20 }
 0x260   :  { %512 = vst [vmem:[#allocation11] sm:$0xff] %v498_v21 }
 0x265   :  { %v499_v22 = vpop.f32.mrf.mxu3 }
 0x266   :  { %v500_v23 = vadd.f32 %v727_v19, %v499_v22 }
 0x268   :  { %513 = vst [vmem:[#allocation11 + $0x8] sm:$0xff] %v500_v23 }
 0x26d   :  { %v502_v24 = vpop.f32.mrf.mxu3 }
 0x26e   :  { %v503_v25 = vadd.f32 %v727_v19, %v502_v24 }
 0x270   :  { %514 = vst [vmem:[#allocation11 + $0x10] sm:$0xff] %v503_v25 }
 0x275   :  { %v504_v26 = vpop.f32.mrf.mxu3 }
 0x276   :  { %v505_v27 = vadd.f32 %v727_v19, %v504_v26 }
 0x278   :  { %515 = vst [vmem:[#allocation11 + $0x18] sm:$0xff] %v505_v27 }
 0x27d   :  { %v507_v28 = vpop.f32.mrf.mxu3 }
 0x27e   :  { %v508_v29 = vadd.f32 %v727_v19, %v507_v28 }
 0x280   :  { %516 = vst [vmem:[#allocation11 + $0x20] sm:$0xff] %v508_v29 }
 0x285   :  { %v509_v30 = vpop.f32.mrf.mxu3 }
 0x286   :  { %v510_v31 = vadd.f32 %v727_v19, %v509_v30 }
 0x288   :  { %517 = vst [vmem:[#allocation11 + $0x28] sm:$0xff] %v510_v31 }
 0x289   :  { %530 = dma.vmem_to_hbm [thread:$0]  %s523_s16, 768, %s525_s8, [#allocation4], %s888_s19, %s888_s19, %s889_s20  }
 0x28a   :  { %878 = dma.done.wait [#allocation4], 768  }
 0x28b   :  { %879 = vsyncadd [#allocation4], 4294966528 }
 0x28c   :  { %535 = vsyncpa [#allocation3], 1 }
 0x28d   :  { %536 = vsyncpa [#allocation6], 1 }
 0x28e   :  { %537 = vsyncpa [#allocation9], 1 }
 0x28f   :  { %538 = vsyncpa [#allocation4], 1 }

</bundles_post_ra>
